<compile_context>
chip_gen: v5e
topology: v5e:2x2
jax: 0.10.0
libtpu: 0.0.40
codegen_flags: <defaults>
</compile_context>

<pallas_src>
import functools

import jax
import jax.numpy as jnp
from jax import lax
from jax.experimental import pallas as pl
from jax.experimental.pallas import tpu as pltpu

_LANES = 128
_NEG_INF = float("-inf")


# ----------------------------- Pallas kernel ------------------------------- #

def _channel_attention_kernel(x_ref, w1_ref, w2_ref, o_ref, sum_ref, max_ref,
                              *, hw, hw_tile, acc_w, inv_hw):
    """Fused global avg/max pool + shared MLP + sigmoid for one image.

    Grid = (N, cdiv(HW, hw_tile)); the spatial axis is a reduction axis.

    x_ref:   (1, C, hw_tile)   one spatial slab of one image (channels-major)
    w1_ref:  (Ch, C)           first 1x1 conv weight (Ch = C // 16)
    w2_ref:  (C, Ch)           second 1x1 conv weight
    o_ref:   (1, C, 1)         sigmoid(channel attention), resident across k
    sum_ref: (C, acc_w) f32    per-lane running spatial sum   (avg pool)
    max_ref: (C, acc_w) f32    per-lane running spatial max
    """
    k = pl.program_id(1)
    num_k = pl.num_programs(1)
    c = x_ref.shape[1]

    num_tiles = (hw + hw_tile - 1) // hw_tile          # static
    tail_start = (num_tiles - 1) * hw_tile             # static
    n_slabs = hw_tile // acc_w                          # static (>=1)

    @pl.when(k == 0)
    def _init():
        sum_ref[...] = jnp.zeros_like(sum_ref)
        max_ref[...] = jnp.full_like(max_ref, _NEG_INF)

    def _accumulate(tail):
        # Register partials per tile (VPU element-wise only); merged into the
        # VMEM scratch once per tile.  The cross-lane reduce is deferred to the
        # finalize block.
        p_sum = jnp.zeros((c, acc_w), jnp.float32)
        p_max = jnp.full((c, acc_w), _NEG_INF, jnp.float32)
        if tail:
            lane = lax.broadcasted_iota(jnp.int32, (1, acc_w), 1)
        for s in range(n_slabs):
            lo = s * acc_w
            if tail and tail_start + lo >= hw:
                continue                                 # slab fully OOB: skip
            xs = x_ref[0, :, lo:lo + acc_w].astype(jnp.float32)   # (C, acc_w)
            if tail and tail_start + lo + acc_w > hw:
                valid = (lane + (tail_start + lo)) < hw            # (1, acc_w)
                p_sum = p_sum + jnp.where(valid, xs, 0.0)
                p_max = jnp.maximum(p_max, jnp.where(valid, xs, _NEG_INF))
            else:
                p_sum = p_sum + xs
                p_max = jnp.maximum(p_max, xs)
        sum_ref[...] = sum_ref[...] + p_sum
        max_ref[...] = jnp.maximum(max_ref[...], p_max)

    if hw % hw_tile == 0:
        _accumulate(tail=False)                          # no masking anywhere
    else:
        @pl.when(k != num_k - 1)
        def _body():
            _accumulate(tail=False)

        @pl.when(k == num_k - 1)
        def _tail():
            _accumulate(tail=True)

    @pl.when(k == num_k - 1)
    def _finalize():
        # Single cross-lane reduce per image, then one small fused MLP.
        avg = jnp.sum(sum_ref[...], axis=1, keepdims=True) * inv_hw   # (C, 1)
        mx = jnp.max(max_ref[...], axis=1, keepdims=True)             # (C, 1)
        pooled = jnp.concatenate([avg, mx], axis=1)                   # (C, 2)
        w1 = w1_ref[...].astype(jnp.float32)                          # (Ch, C)
        w2 = w2_ref[...].astype(jnp.float32)                          # (C, Ch)
        h = jnp.maximum(
            jnp.dot(w1, pooled, preferred_element_type=jnp.float32), 0.0)  # (Ch, 2)
        y = jnp.dot(w2, h, preferred_element_type=jnp.float32)        # (C, 2)
        logits = y[:, 0:1] + y[:, 1:2]                                # (C, 1)
        o_ref[0] = (1.0 / (1.0 + jnp.exp(-logits))).astype(o_ref.dtype)


# ------------------------------ host wrapper -------------------------------- #

def _pick_hw_tile(hw, c, itemsize, target_bytes=2 << 20, max_lanes=8192):
    """Byte-budgeted, 128-lane-aligned spatial tile (tail handled in-kernel)."""
    if hw <= _LANES:
        return hw                                   # single full-extent block
    lanes = (target_bytes // max(c * itemsize, 1)) // _LANES * _LANES
    lanes = max(_LANES, min(lanes, max_lanes))
    # Never exceed the largest 128-multiple inside HW; cdiv+mask covers the tail.
    return min(lanes, (hw // _LANES) * _LANES)


def channel_attention(x_nchw, w1, w2):
    """x_nchw: (N, C, H, W); w1: (C//16, C); w2: (C, C//16). Returns (N, C, 1, 1)."""
    N, C, H, W = x_nchw.shape
    HW = H * W
    hidden = w1.shape[0]
    itemsize = jnp.dtype(x_nchw.dtype).itemsize

    hw_tile = _pick_hw_tile(HW, C, itemsize)
    acc_w = min(hw_tile, _LANES)
    num_tiles = pl.cdiv(HW, hw_tile)

    xr = x_nchw.reshape(N, C, HW)                   # free reshape, no transpose

    w_bytes = (w1.size * jnp.dtype(w1.dtype).itemsize
               + w2.size * jnp.dtype(w2.dtype).itemsize)
    need = (2 * C * hw_tile * itemsize              # double-buffered x block
            + 2 * w_bytes                           # double-buffered weights
            + 2 * C * itemsize                      # output block
            + 2 * C * acc_w * 4)                    # f32 sum/max scratch
    vmem_limit = int(min(60 << 20, max(need + (8 << 20), 32 << 20)))

    kernel = functools.partial(
        _channel_attention_kernel,
        hw=HW, hw_tile=hw_tile, acc_w=acc_w, inv_hw=1.0 / HW)

    out = pl.pallas_call(
        kernel,
        out_shape=jax.ShapeDtypeStruct((N, C, 1), x_nchw.dtype),
        grid=(N, num_tiles),
        in_specs=[
            pl.BlockSpec((1, C, hw_tile), lambda n, k: (n, 0, k)),
            pl.BlockSpec((hidden, C), lambda n, k: (0, 0)),
            pl.BlockSpec((C, hidden), lambda n, k: (0, 0)),
        ],
        out_specs=pl.BlockSpec((1, C, 1), lambda n, k: (n, 0, 0)),
        scratch_shapes=[
            pltpu.VMEM((C, acc_w), jnp.float32),    # running per-lane sum
            pltpu.VMEM((C, acc_w), jnp.float32),    # running per-lane max
        ],
        compiler_params=pltpu.CompilerParams(
            dimension_semantics=("parallel", "arbitrary"),
            vmem_limit_bytes=vmem_limit),
    )(xr, w1, w2)                                   # weights in native dtype

    return out.reshape(N, C, 1, 1)


# --------------------------- pure-JAX reference ----------------------------- #

def channel_attention_reference(x_nchw, w1, w2):
    N, C, H, W = x_nchw.shape
    xf = x_nchw.astype(jnp.float32)
    avg = jnp.mean(xf, axis=(2, 3))                                  # (N, C)
    mx = jnp.max(xf, axis=(2, 3))                                    # (N, C)

    def fc(p):
        h = jnp.maximum(p @ w1.astype(jnp.float32).T, 0.0)           # (N, C//16)
        return h @ w2.astype(jnp.float32).T                          # (N, C)

    out = jax.nn.sigmoid(fc(avg) + fc(mx))
    return out.reshape(N, C, 1, 1).astype(x_nchw.dtype)


# --------------------------------- main ------------------------------------ #

if __name__ == "__main__":
    key = jax.random.PRNGKey(0)

    def run_case(N, C, H, W, case_key):
        hidden = max(C // 16, 1)                    # module hard-codes ratio 16
        k_x, k_w1, k_w2 = jax.random.split(case_key, 3)
        x = jax.random.normal(k_x, (N, C, H, W), jnp.float32)
        w1 = 0.1 * jax.random.normal(k_w1, (hidden, C), jnp.float32)
        w2 = 0.1 * jax.random.normal(k_w2, (C, hidden), jnp.float32)

        out = jax.block_until_ready(channel_attention(x, w1, w2))
        ref = jax.block_until_ready(channel_attention_reference(x, w1, w2))
        assert out.shape == (N, C, 1, 1), out.shape
        err = float(jnp.max(jnp.abs(out.astype(jnp.float32)
                                    - ref.astype(jnp.float32))))
        if err > 1e-4:
            raise AssertionError(
                f"Pallas ChannelAttention mismatch for {(N, C, H, W)}: "
                f"max abs err = {err}")

    k1, k2 = jax.random.split(key)
    run_case(2, 64, 16, 16, k1)   # aligned HW=256: single tile, no masking
    run_case(2, 32, 15, 15, k2)   # HW=225: multi-tile reduction + masked tail
    print("KERNEL_OK")
</pallas_src>

<mosaic_0001>
module attributes {stable_mosaic.version = 11 : i64} {
  func.func @_channel_attention_kernel(%arg0: i32, %arg1: i32, %arg2: memref<1x64x256xf32, #tpu.memory_space<vmem>>, %arg3: memref<4x64xf32, #tpu.memory_space<vmem>>, %arg4: memref<64x4xf32, #tpu.memory_space<vmem>>, %arg5: memref<1x64x1xf32, #tpu.memory_space<vmem>>, %arg6: memref<64x128xf32, #tpu.memory_space<vmem>>, %arg7: memref<64x128xf32, #tpu.memory_space<vmem>>) attributes {dimension_semantics = [#tpu.dimension_semantics<parallel>, #tpu.dimension_semantics<arbitrary>], iteration_bounds = array<i64: 2, 1>, scalar_prefetch = 0 : i64, scratch_operands = 2 : i64, tpu.core_type = #tpu.core_type<tc>, window_params = [{transform_indices = @transform_0, window_bounds = array<i64: 1, 64, 256>}, {pipeline_mode = #tpu.pipeline_mode<synchronous>, transform_indices = @transform_1, window_bounds = array<i64: 4, 64>}, {pipeline_mode = #tpu.pipeline_mode<synchronous>, transform_indices = @transform_2, window_bounds = array<i64: 64, 4>}, {transform_indices = @transform_3, window_bounds = array<i64: 1, 64, 1>}]} {
    %c0_i32 = arith.constant 0 : i32
    %0 = arith.cmpi eq, %arg1, %c0_i32 : i32
    %1 = arith.extui %0 : i1 to i32
    %c0_i32_0 = arith.constant 0 : i32
    %2 = arith.cmpi ne, %1, %c0_i32_0 : i32
    scf.if %2 {
      %cst_16 = arith.constant 0.000000e+00 : f32
      %22 = vector.broadcast %cst_16 : f32 to vector<64x128xf32>
      %c0_17 = arith.constant 0 : index
      %c0_18 = arith.constant 0 : index
      %23 = vector.load %arg6[%c0_17, %c0_18] : memref<64x128xf32, #tpu.memory_space<vmem>>, vector<64x128xf32>
      tpu.vector_store %arg6[%c0_17, %c0_18], %22 {strides = array<i32>} : memref<64x128xf32, #tpu.memory_space<vmem>>, vector<64x128xf32>,
      %cst_19 = arith.constant 0xFF800000 : f32
      %24 = vector.broadcast %cst_19 : f32 to vector<64x128xf32>
      %c0_20 = arith.constant 0 : index
      %c0_21 = arith.constant 0 : index
      %25 = vector.load %arg7[%c0_20, %c0_21] : memref<64x128xf32, #tpu.memory_space<vmem>>, vector<64x128xf32>
      tpu.vector_store %arg7[%c0_20, %c0_21], %24 {strides = array<i32>} : memref<64x128xf32, #tpu.memory_space<vmem>>, vector<64x128xf32>,
    } else {
    }
    %cst = arith.constant 0.000000e+00 : f32
    %3 = vector.broadcast %cst : f32 to vector<64x128xf32>
    %cst_1 = arith.constant 0xFF800000 : f32
    %4 = vector.broadcast %cst_1 : f32 to vector<64x128xf32>
    %c0 = arith.constant 0 : index
    %c0_2 = arith.constant 0 : index
    %c0_3 = arith.constant 0 : index
    %5 = vector.load %arg2[%c0, %c0_2, %c0_3] : memref<1x64x256xf32, #tpu.memory_space<vmem>>, vector<1x64x128xf32>
    %6 = vector.shape_cast %5 : vector<1x64x128xf32> to vector<64x128xf32>
    %7 = arith.addf %3, %6 : vector<64x128xf32>
    %8 = arith.maximumf %4, %6 : vector<64x128xf32>
    %c0_4 = arith.constant 0 : index
    %c0_5 = arith.constant 0 : index
    %c128 = arith.constant 128 : index
    %9 = vector.load %arg2[%c0_4, %c0_5, %c128] : memref<1x64x256xf32, #tpu.memory_space<vmem>>, vector<1x64x128xf32>
    %10 = vector.shape_cast %9 : vector<1x64x128xf32> to vector<64x128xf32>
    %11 = arith.addf %7, %10 : vector<64x128xf32>
    %12 = arith.maximumf %8, %10 : vector<64x128xf32>
    %c0_6 = arith.constant 0 : index
    %c0_7 = arith.constant 0 : index
    %13 = vector.load %arg6[%c0_6, %c0_7] : memref<64x128xf32, #tpu.memory_space<vmem>>, vector<64x128xf32>
    %14 = arith.addf %13, %11 : vector<64x128xf32>
    %c0_8 = arith.constant 0 : index
    %c0_9 = arith.constant 0 : index
    %15 = vector.load %arg6[%c0_8, %c0_9] : memref<64x128xf32, #tpu.memory_space<vmem>>, vector<64x128xf32>
    tpu.vector_store %arg6[%c0_8, %c0_9], %14 {strides = array<i32>} : memref<64x128xf32, #tpu.memory_space<vmem>>, vector<64x128xf32>,
    %c0_10 = arith.constant 0 : index
    %c0_11 = arith.constant 0 : index
    %16 = vector.load %arg7[%c0_10, %c0_11] : memref<64x128xf32, #tpu.memory_space<vmem>>, vector<64x128xf32>
    %17 = arith.maximumf %16, %12 : vector<64x128xf32>
    %c0_12 = arith.constant 0 : index
    %c0_13 = arith.constant 0 : index
    %18 = vector.load %arg7[%c0_12, %c0_13] : memref<64x128xf32, #tpu.memory_space<vmem>>, vector<64x128xf32>
    tpu.vector_store %arg7[%c0_12, %c0_13], %17 {strides = array<i32>} : memref<64x128xf32, #tpu.memory_space<vmem>>, vector<64x128xf32>,
    %c0_i32_14 = arith.constant 0 : i32
    %19 = arith.cmpi eq, %arg1, %c0_i32_14 : i32
    %20 = arith.extui %19 : i1 to i32
    %c0_i32_15 = arith.constant 0 : i32
    %21 = arith.cmpi ne, %20, %c0_i32_15 : i32
    scf.if %21 {
      %c0_16 = arith.constant 0 : index
      %c0_17 = arith.constant 0 : index
      %22 = vector.load %arg6[%c0_16, %c0_17] : memref<64x128xf32, #tpu.memory_space<vmem>>, vector<64x128xf32>
      %cst_18 = arith.constant dense<0.000000e+00> : vector<64xf32>
      %23 = vector.multi_reduction <add>, %22, %cst_18 [1] : vector<64x128xf32> to vector<64xf32>
      %24 = vector.shape_cast %23 : vector<64xf32> to vector<64x1xf32>
      %cst_19 = arith.constant 3.906250e-03 : f32
      %25 = vector.broadcast %cst_19 : f32 to vector<64x1xf32>
      %26 = arith.mulf %24, %25 : vector<64x1xf32>
      %c0_20 = arith.constant 0 : index
      %c0_21 = arith.constant 0 : index
      %27 = vector.load %arg7[%c0_20, %c0_21] : memref<64x128xf32, #tpu.memory_space<vmem>>, vector<64x128xf32>
      %cst_22 = arith.constant dense<0xFF800000> : vector<64xf32>
      %28 = vector.multi_reduction <maximumf>, %27, %cst_22 [1] : vector<64x128xf32> to vector<64xf32>
      %29 = vector.shape_cast %28 : vector<64xf32> to vector<64x1xf32>
      %30 = tpu.concatenate %26, %29 in 1 : vector<64x1xf32>, vector<64x1xf32> -> vector<64x2xf32>
      %c0_23 = arith.constant 0 : index
      %c0_24 = arith.constant 0 : index
      %31 = vector.load %arg3[%c0_23, %c0_24] : memref<4x64xf32, #tpu.memory_space<vmem>>, vector<4x64xf32>
      %c0_25 = arith.constant 0 : index
      %c0_26 = arith.constant 0 : index
      %32 = vector.load %arg4[%c0_25, %c0_26] : memref<64x4xf32, #tpu.memory_space<vmem>>, vector<64x4xf32>
      %cst_27 = arith.constant dense<0.000000e+00> : vector<4x2xf32>
      %33 = tpu.matmul %31, %30, %cst_27 {dimension_numbers = #tpu.dot_dimension_numbers<[1], [0], [0], [1], [0, 0, 1, 1], [], []>} : vector<4x64xf32>, vector<64x2xf32>, vector<4x2xf32> -> vector<4x2xf32>
      %cst_28 = arith.constant 0.000000e+00 : f32
      %34 = vector.broadcast %cst_28 : f32 to vector<4x2xf32>
      %35 = arith.maximumf %33, %34 : vector<4x2xf32>
      %cst_29 = arith.constant dense<0.000000e+00> : vector<64x2xf32>
      %36 = tpu.matmul %32, %35, %cst_29 {dimension_numbers = #tpu.dot_dimension_numbers<[1], [0], [0], [1], [0, 0, 1, 1], [], []>} : vector<64x4xf32>, vector<4x2xf32>, vector<64x2xf32> -> vector<64x2xf32>
      %37 = vector.extract_strided_slice %36 {offsets = [0, 0], sizes = [64, 1], strides = [1, 1]} : vector<64x2xf32> to vector<64x1xf32>
      %38 = vector.extract_strided_slice %36 {offsets = [0, 1], sizes = [64, 1], strides = [1, 1]} : vector<64x2xf32> to vector<64x1xf32>
      %39 = arith.addf %37, %38 : vector<64x1xf32>
      %cst_30 = arith.constant 0.000000e+00 : f32
      %40 = vector.broadcast %cst_30 : f32 to vector<64x1xf32>
      %41 = arith.subf %40, %39 : vector<64x1xf32>
      %42 = math.exp %41 : vector<64x1xf32>
      %cst_31 = arith.constant 1.000000e+00 : f32
      %43 = vector.broadcast %cst_31 : f32 to vector<64x1xf32>
      %44 = arith.addf %43, %42 : vector<64x1xf32>
      %cst_32 = arith.constant 1.000000e+00 : f32
      %45 = vector.broadcast %cst_32 : f32 to vector<64x1xf32>
      %46 = arith.divf %45, %44 : vector<64x1xf32>
      %c0_33 = arith.constant 0 : index
      %c0_34 = arith.constant 0 : index
      %c0_35 = arith.constant 0 : index
      %47 = vector.load %arg5[%c0_33, %c0_34, %c0_35] : memref<1x64x1xf32, #tpu.memory_space<vmem>>, vector<1x64x1xf32>
      %48 = vector.shape_cast %47 : vector<1x64x1xf32> to vector<64x1xf32>
      %49 = vector.shape_cast %46 : vector<64x1xf32> to vector<1x64x1xf32>
      tpu.vector_store %arg5[%c0_33, %c0_34, %c0_35], %49 {strides = array<i32>} : memref<1x64x1xf32, #tpu.memory_space<vmem>>, vector<1x64x1xf32>,
    } else {
    }
    return
  }
  func.func @transform_0(%arg0: i32, %arg1: i32) -> (i32, i32, i32) {
    %c0_i32 = arith.constant 0 : i32
    %c0_i32_0 = arith.constant 0 : i32
    return %arg0, %c0_i32, %arg1 : i32, i32, i32
  }
  func.func @transform_1(%arg0: i32, %arg1: i32) -> (i32, i32) {
    %c0_i32 = arith.constant 0 : i32
    %c0_i32_0 = arith.constant 0 : i32
    %c0_i32_1 = arith.constant 0 : i32
    return %c0_i32, %c0_i32_0 : i32, i32
  }
  func.func @transform_2(%arg0: i32, %arg1: i32) -> (i32, i32) {
    %c0_i32 = arith.constant 0 : i32
    %c0_i32_0 = arith.constant 0 : i32
    %c0_i32_1 = arith.constant 0 : i32
    return %c0_i32, %c0_i32_0 : i32, i32
  }
  func.func @transform_3(%arg0: i32, %arg1: i32) -> (i32, i32, i32) {
    %c0_i32 = arith.constant 0 : i32
    %c0_i32_0 = arith.constant 0 : i32
    %c0_i32_1 = arith.constant 0 : i32
    return %arg0, %c0_i32, %c0_i32_0 : i32, i32, i32
  }
}

</mosaic_0001>

<bundles_post_ra>
// kernel: tpu_custom_call.1
= control target key start
LH: loop header
LB: loop body
LE: loop exit
PB: predicated region body
PF: predicated region fallthrough
CT: control target
= control target key end

     0   :  { %8 = vsyncpa [#allocation5], 0  ;;  %s1186_s0 = inlined_call_operand.hbm [shape: f32[2,64,256], index: 0, kind: input, shape index: {}]   ;;  %s1187_s1 = inlined_call_operand.vmem [shape: f32[4,64], index: 1, kind: input, shape index: {}]   ;;  %s1188_s2 = inlined_call_operand.vmem [shape: f32[64,4], index: 2, kind: input, shape index: {}]   ;;  %s1189_s3 = inlined_call_operand.vmem [shape: f32[2,64,1], index: 3, kind: output, shape index: {}]  }
   0x1   :  { %10 = vsyncpa [#allocation5 + $0x1], 0  ;;  %s990_s12 = smov 0   ;;  %s992_s13 = smov 0  }
   0x2   :  { %s994_s14 = smov 0   ;;  %s996_s15 = smov 0  }
   0x3   :  { %s998_s16 = smov 0   ;;  %s1000_s17 = smov 0  }
   0x4 LB: > { %s768_s18 = sadd.s32 4294967295, %s965_s17   ;;  %s28_s19 = sadd.s32 1, %s961_s16  ;;  %s965_s17 = sphi %s1000_s17, %s16_s17   ;;  %s961_s16 = sphi %s998_s16, %s1198_s16   ;;  %s957_s15 = sphi %s996_s15, %s1197_s15   ;;  %s953_s14 = sphi %s994_s14, %s1196_s14   ;;  %s949_s13 = sphi %s992_s13, %s1195_s13   ;;  %s945_s12 = sphi %s990_s12, %s1194_s12  }
   0x5   : > { %p30_p0 = scmp.ge.s32.totalorder %s28_s19, 2  ;;  %s37_s20 = sadd.s32 1, %s953_s14 }
   0x6   : > { %p44_p1 = scmp.ne.s32.totalorder %s953_s14, %s949_s13  ;;  %p45_p2 = scmp.eq.s32.totalorder %s965_s17, 0 }
   0x7   : > { %s1200_s19 = smov (%p30_p0, %s28_s19), 0  ;;  %p50_p4 = scmp.ne.s32.totalorder %s949_s13, %s945_s12 }
   0x8   : > { %p1026_p3 = por %p45_p2, %p44_p1  ;;  %s32_s22 = ssub.s32 %s961_s16, %s1200_s19 }
   0x9   : > { %p51_p5 = scmp.eq.s32.totalorder %s768_s18, 0  ;;  %p35_p6 = scmp.eq.s32.totalorder %s32_s22, 0 }
   0xa   : > { %p801_p8 = scmp.lt.s32.totalorder %s965_s17, 2  ;;  %s148_s25 = sand.u32 1, %s953_s14  }
   0xb   : > { %p1033_p7 = por %p51_p5, %p50_p4  ;;  %s791_s26 = sshll.u32 %s961_s16, 7 }
   0xc   : > { %s1039_s24 = scalar_select %p35_p6, %s953_s14, %s37_s20  }
   0xd   : > { %s772_s27 = sshll.u32 %s148_s25, 7  ;;  %s159_s30 = scalar_lea.hbm %s1186_s0, %s791_s26 }
   0xe   : > { %s160_s4 = sshll.u32 %s159_s30, 4  ;;  %s152_s5 = scalar_lea.vmem [#allocation4], %s772_s27  ;;  %s161_s4 = int_to_ptr.hbm [resolvable:$true] %s160_s4 }
   0xf   : > { %s162_s6 = sshll.u32 %s152_s5, 4  ;;  %p798_p9 = pnand %p801_p8, %p1026_p3  ;;  %s163_s6 = int_to_ptr.vmem [resolvable:$true] %s162_s6 }
  0x10   : > { %p775_p10 = scmp.ge.s32.totalorder %s965_s17, 1  ;;  %p170_p11 = scmp.lt.s32.totalorder %s965_s17, 3 }
  0x11   : > { %s149_s7 = scalar_lea.sflag [#allocation5], %s148_s25  ;;  %s967_s8 = smov 256  }
  0x12   : > { %s968_s9 = smov 16   ;;  %p171_p12 = pnand %p775_p10, %p170_p11 }
  0x13   : > { %800 = dma.hbm_to_vmem [thread:$0]  (!%p798_p9), %s161_s4, 2048, %s163_s6, %s149_s7, %s967_s8, %s967_s8, %s968_s9  }
  0x14   : > { %174 = sbr.rel (%p171_p12) target bundleno = 614 (0x266), region = 32  ;;  %s176_s10 = sand.u32 (!%p171_p12), 1, %s949_s13  }
  0x15   : > { %s776_s11 = sshll.u32 (!%p171_p12), %s176_s10, 7  ;;  %s177_s12 = scalar_lea.sflag (!%p171_p12), [#allocation5], %s176_s10 }
  0x16   : > { %s1051_s18 = scalar_lea.vmem (!%p171_p12), [#allocation4], %s776_s11 }
  0x19   : > { %940 = dma.done.wait (%p1033_p7), %s177_s12, 2048  }
  0x1a   : > { %942 = vsyncadd (%p1033_p7), %s177_s12, 4294965248  ;;  %v237_v0 = vld [vmem:[%s1051_s18 + $0x70] sm:$0xff]  ;;  %v253_v1 = vld [vmem:[%s1051_s18 + $0x78] sm:$0xff]  ;;  %vm377_vm0 = vcmask 7168   ;;  %vm395_vm1 = vcmask 523264   ;;  %vm445_vm2 = vcmask 1043456  }
  0x1b   : > { %v236_v2 = vld [vmem:[%s1051_s18 + $0x60] sm:$0xff]  ;;  %v269_v3 = vmax.f32 %v237_v0, %v253_v1  ;;  %v261_v4 = vadd.f32 %v253_v1, %v237_v0  ;;  %v252_v5 = vld [vmem:[%s1051_s18 + $0x68] sm:$0xff]  ;;  %v235_v7 = vld [vmem:[%s1051_s18 + $0x50] sm:$0xff]  ;;  %vm420_vm3 = vcmask 31744   ;;  %s969_s12 = smov 127   ;;  %p205_p13 = scmp.lt.s32.totalorder %s957_s15, 1 }
  0x1c   : > { %v268_v6 = vmax.f32 %v236_v2, %v252_v5  ;;  %v251_v8 = vld [vmem:[%s1051_s18 + $0x58] sm:$0xff]  ;;  %v234_v9 = vld [vmem:[%s1051_s18 + $0x40] sm:$0xff]  ;;  %v250_v10 = vld [vmem:[%s1051_s18 + $0x48] sm:$0xff]  ;;  %v260_v11 = vadd.f32 %v252_v5, %v236_v2 }
  0x1d   : > { %375 = vmax.xlane.f32.xlu1 %v269_v3  ;;  %343 = vadd.xlane.f32.xlu0 %v261_v4  ;;  %v259_v12 = vadd.f32 %v251_v8, %v235_v7  ;;  %v258_v13 = vadd.f32 %v250_v10, %v234_v9  ;;  %v233_v14 = vld [vmem:[%s1051_s18 + $0x30] sm:$0xff]  ;;  %v249_v15 = vld [vmem:[%s1051_s18 + $0x38] sm:$0xff]  ;;  %v267_v16 = vmax.f32 %v235_v7, %v251_v8  ;;  %v232_v19 = vld [vmem:[%s1051_s18 + $0x20] sm:$0xff]  ;;  %s1202_s15 = smov (!%p205_p13, %s957_s15), 1 }
  0x1e   : > { %373 = vmax.xlane.f32.xlu2 %v268_v6  ;;  %v257_v17 = vadd.f32 %v249_v15, %v233_v14  ;;  %v266_v18 = vmax.f32 %v234_v9, %v250_v10  ;;  %v248_v20 = vld [vmem:[%s1051_s18 + $0x28] sm:$0xff]  ;;  %v231_v21 = vld [vmem:[%s1051_s18 + $0x10] sm:$0xff]  ;;  %v247_v22 = vld [vmem:[%s1051_s18 + $0x18] sm:$0xff]  ;;  %v265_v23 = vmax.f32 %v233_v14, %v249_v15 }
  0x1f   : > { %v256_v24 = vadd.f32 %v248_v20, %v232_v19  ;;  %v255_v25 = vadd.f32 %v247_v22, %v231_v21  ;;  %v230_v26 = vld [vmem:[%s1051_s18] sm:$0xff]  ;;  %v246_v27 = vld [vmem:[%s1051_s18 + $0x8] sm:$0xff]  ;;  %v264_v28 = vmax.f32 %v232_v19, %v248_v20  ;;  %v263_v30 = vmax.f32 %v231_v21, %v247_v22  ;;  %v390_v4 = vld [vmem:[%s1188_s2 + $0x18] sm:$0xff]  ;;  %s792_s18 = sshll.u32 %s1202_s15, 6 }
  0x20   : > { %v254_v29 = vadd.f32 %v246_v27, %v230_v26  ;;  %v262_v31 = vmax.f32 %v230_v26, %v246_v27  ;;  %v386_v63 = vld [vmem:[%s1187_s1] sm:$0xf]  ;;  %v393_v5 = vld [vmem:[%s1188_s2 + $0x30] sm:$0xff]  ;;  %v388_v6 = vld [vmem:[%s1188_s2 + $0x8] sm:$0xff]  ;;  %s1133_s22 = scalar_lea.vmem %s1189_s3, %s792_s18 }
  0x21   : > { %v387_v3 = vld [vmem:[%s1188_s2] sm:$0xff]  ;;  %v394_v8 = vld [vmem:[%s1188_s2 + $0x38] sm:$0xff]  ;;  %v389_v9 = vld [vmem:[%s1188_s2 + $0x10] sm:$0xff] }
  0x22   : > { %v391_v7 = vld [vmem:[%s1188_s2 + $0x20] sm:$0xff]  ;;  %v392_v10 = vld [vmem:[%s1188_s2 + $0x28] sm:$0xff] }
  0x25   : > { %341 = vadd.xlane.f32.xlu0 %v260_v11  ;;  %339 = vadd.xlane.f32.xlu1 %v259_v12 }
  0x26   : > { %337 = vadd.xlane.f32.xlu2 %v258_v13 }
  0x2d   : > { %371 = vmax.xlane.f32.xlu0 %v267_v16  ;;  %335 = vadd.xlane.f32.xlu1 %v257_v17 }
  0x2e   : > { %369 = vmax.xlane.f32.xlu2 %v266_v18 }
  0x35   : > { %367 = vmax.xlane.f32.xlu1 %v265_v23  ;;  %333 = vadd.xlane.f32.xlu0 %v256_v24 }
  0x36   : > { %331 = vadd.xlane.f32.xlu2 %v255_v25 }
  0x3d   : > { %365 = vmax.xlane.f32.xlu0 %v264_v28  ;;  %329 = vadd.xlane.f32.xlu1 %v254_v29 }
  0x3e   : > { %363 = vmax.xlane.f32.xlu2 %v263_v30 }
  0x45   : > { %361 = vmax.xlane.f32.xlu0 %v262_v31 }
  0x90   : > { %v376_v32 = vpop.xlane.xlu1 %375  ;;  %v344_v33 = vpop.xlane.xlu0 %343 }
  0x91   : > { %v352_v34 = vmul.f32 0.00390625, %v344_v33  ;;  %v374_v35 = vpop.xlane.xlu2 %373 }
  0x93   : > { %v385_v36 = vsel %vm377_vm0, %v352_v34, %v376_v32 }
  0x94   : > { %407 = vmatpush.msra.mxu0 %v385_v36 }
  0x98   : > { %v342_v37 = vpop.xlane.xlu0 %341  ;;  %v340_v38 = vpop.xlane.xlu1 %339 }
  0x99   : > { %v351_v39 = vmul.f32 0.00390625, %v342_v37  ;;  %v338_v40 = vpop.xlane.xlu2 %337  ;;  %v350_v42 = vmul.f32 0.00390625, %v340_v38 }
  0x9a   : > { %v349_v43 = vmul.f32 0.00390625, %v338_v40 }
  0x9b   : > { %v384_v41 = vsel %vm377_vm0, %v351_v39, %v374_v35 }
  0x9c   : > { %408 = vmatpush.msra.mxu0 %v384_v41 }
  0xa0   : > { %v372_v44 = vpop.xlane.xlu0 %371  ;;  %v336_v45 = vpop.xlane.xlu1 %335 }
  0xa1   : > { %v370_v46 = vpop.xlane.xlu2 %369  ;;  %v383_v47 = vsel %vm377_vm0, %v350_v42, %v372_v44  ;;  %v348_v49 = vmul.f32 0.00390625, %v336_v45 }
  0xa2   : > { %409 = vmatpush.msra.mxu0 %v383_v47  ;;  %v382_v48 = vsel %vm377_vm0, %v349_v43, %v370_v46 }
  0xa4   : > { %410 = vmatpush.msra.mxu0 %v382_v48 }
  0xa8   : > { %v368_v50 = vpop.xlane.xlu1 %367  ;;  %v334_v51 = vpop.xlane.xlu0 %333 }
  0xa9   : > { %v332_v52 = vpop.xlane.xlu2 %331  ;;  %v381_v53 = vsel %vm377_vm0, %v348_v49, %v368_v50  ;;  %v347_v54 = vmul.f32 0.00390625, %v334_v51 }
  0xaa   : > { %411 = vmatpush.msra.mxu0 %v381_v53  ;;  %v346_v55 = vmul.f32 0.00390625, %v332_v52 }
  0xb0   : > { %v366_v56 = vpop.xlane.xlu0 %365  ;;  %v330_v59 = vpop.xlane.xlu1 %329 }
  0xb1   : > { %v364_v57 = vpop.xlane.xlu2 %363  ;;  %v380_v58 = vsel %vm377_vm0, %v347_v54, %v366_v56  ;;  %v345_v61 = vmul.f32 0.00390625, %v330_v59 }
  0xb2   : > { %412 = vmatpush.msra.mxu0 %v380_v58  ;;  %v379_v60 = vsel %vm377_vm0, %v346_v55, %v364_v57 }
  0xb4   : > { %413 = vmatpush.msra.mxu0 %v379_v60 }
  0xb8   : > { %v362_v62 = vpop.xlane.xlu0 %361 }
  0xb9   : > { %v378_v0 = vsel %vm377_vm0, %v345_v61, %v362_v62 }
  0xba   : > { %414 = vmatpush.msra.mxu0 %v378_v0 }
  0xbb   : > { %779 = vmatmul.msk.f32.vlgmr.msra.gmra.mxu0 %vm395_vm1, %v386_v63 }
 0x138   : > { %v416_v1 = vpop.f32.mrf.mxu0 }
 0x139   : > { %v419_v2 = vmax.f32 %v416_v1, 0.0 }
 0x13b   : > { %780 = vmatpush.msk.msra.mxu1 %vm445_vm2, %v419_v2  ;;  %793 = vmatpush.msk.msra.mxu2 %vm445_vm2, %v419_v2 }
 0x13c   : > { %794 = vmatpush.msk.msra.mxu3 %vm445_vm2, %v419_v2  ;;  %781 = vmatmul.msk.f32.vlgmr.msra.gmra.mxu1 %vm420_vm3, %v387_v3 }
 0x13d   : > { %784 = vmatmul.msk.f32.vlgmr.msra.gmra.mxu2 %vm420_vm3, %v390_v4  ;;  %787 = vmatmul.msk.f32.vlgmr.msra.gmra.mxu3 %vm420_vm3, %v393_v5 }
 0x144   : > { %782 = vmatmul.msk.f32.gmra.mxu1 %vm420_vm3, %v388_v6 }
 0x145   : > { %785 = vmatmul.msk.f32.gmra.mxu2 %vm420_vm3, %v391_v7  ;;  %788 = vmatmul.msk.f32.gmra.mxu3 %vm420_vm3, %v394_v8 }
 0x14c   : > { %783 = vmatmul.msk.f32.gmra.mxu1 %vm420_vm3, %v389_v9 }
 0x14d   : > { %786 = vmatmul.msk.f32.gmra.mxu2 %vm420_vm3, %v392_v10 }
 0x1b9   : > { %v466_v11 = vpop.f32.mrf.mxu1 }
 0x1ba   : > { %498 = vrot.lane.b32.xlu1 %v466_v11, %s969_s12 }
 0x1c0   : > { %v475_v12 = vpop.f32.mrf.mxu2  ;;  %v484_v14 = vpop.f32.mrf.mxu3 }
 0x1c1   : > { %504 = vrot.lane.b32.xlu2 %v475_v12, %s969_s12  ;;  %v469_v13 = vpop.f32.mrf.mxu1 }
 0x1c8   : > { %v1116_v15 = vpop.f32.mrf.mxu2  ;;  %v1122_v17 = vpop.f32.mrf.mxu3 }
 0x1c9   : > { %506 = vrot.lane.b32.xlu1 %v1116_v15, %s969_s12  ;;  %500 = vrot.lane.b32.xlu2 %v469_v13, %s969_s12  ;;  %v1119_v16 = vpop.f32.mrf.mxu1 }
 0x1ca   : > { %502 = vrot.lane.b32.xlu0 %v1119_v16, %s969_s12 }
 0x1d0   : > { %v1124_v18 = vpop.f32.mrf.mxu2 }
 0x1d1   : > { %512 = vrot.lane.b32.xlu1 %v1122_v17, %s969_s12  ;;  %510 = vrot.lane.b32.xlu2 %v484_v14, %s969_s12 }
 0x1d2   : > { %508 = vrot.lane.b32.xlu0 %v1124_v18, %s969_s12 }
 0x21b   : > { %v505_v19 = vpop.permute.xlu2 %504 }
 0x21c   : > { %v525_v20 = vadd.f32 %v505_v19, %v475_v12 }
 0x21e   : > { %v533_v21 = vsub.f32 0.0, %v525_v20 }
 0x220   : > { %v544_v22 = vmul.f32 1.442695, %v533_v21 }
 0x222   : > { %853 = vpow2.f32 %v544_v22 }
 0x223   : > { %v501_v23 = vpop.permute.xlu2 %500 }
 0x224   : > { %v523_v24 = vadd.f32 %v501_v23, %v469_v13 }
 0x226   : > { %v531_v25 = vsub.f32 0.0, %v523_v24 }
 0x228   : > { %v854_v26 = vpop.eup %853  ;;  %v540_v27 = vmul.f32 1.442695, %v531_v25 }
 0x229   : > { %v557_v28 = vadd.f32 1.0, %v854_v26 }
 0x22a   : > { %855 = vpow2.f32 %v540_v27 }
 0x22b   : > { %857 = vrcp.f32 %v557_v28  ;;  %v511_v29 = vpop.permute.xlu2 %510  ;;  %v618_v42 = vand.u32 2147483648, %v557_v28  ;;  %v616_v44 = vand.u32 2147483647, %v557_v28  ;;  %vm612_vm5 = vweird.f32 %v557_v28 }
 0x22c   : > { %v528_v30 = vadd.f32 %v511_v29, %v484_v14  ;;  %v499_v31 = vpop.permute.xlu1 %498 }
 0x22d   : > { %v522_v32 = vadd.f32 %v499_v31, %v466_v11  ;;  %v619_v48 = vor.u32 1.1754944e-38, %v618_v42  ;;  %vm617_vm7 = vcmp.eq.f32.partialorder %v616_v44, 8.507059e+37 }
 0x22e   : > { %v536_v33 = vsub.f32 0.0, %v528_v30 }
 0x22f   : > { %v530_v34 = vsub.f32 0.0, %v522_v32 }
 0x230   : > { %v856_v35 = vpop.eup %855  ;;  %v550_v36 = vmul.f32 1.442695, %v536_v33 }
 0x231   : > { %v858_v37 = vpop.eup %857  ;;  %v555_v38 = vadd.f32 1.0, %v856_v35  ;;  %v538_v39 = vmul.f32 1.442695, %v530_v34 }
 0x232   : > { %v608_v40 = vmul.f32 %v858_v37, %v557_v28  ;;  %859 = vpow2.f32 %v550_v36  ;;  %vm613_vm4 = vweird.f32 %v858_v37 }
 0x233   : > { %861 = vrcp.f32 %v555_v38  ;;  %vm614_vm6 = vmor %vm612_vm5, %vm613_vm4  ;;  %v588_v59 = vand.u32 2147483648, %v555_v38  ;;  %v586_v62 = vand.u32 2147483647, %v555_v38  ;;  %vm582_vm9 = vweird.f32 %v555_v38 }
 0x234   : > { %v609_v41 = vsub.f32 1.0, %v608_v40  ;;  %863 = vpow2.f32 %v538_v39 }
 0x235   : > { %v589_v3 = vor.u32 1.1754944e-38, %v588_v59  ;;  %vm587_vm11 = vcmp.eq.f32.partialorder %v586_v62, 8.507059e+37 }
 0x236   : > { %v610_v43 = vmul.f32 %v858_v37, %v609_v41 }
 0x238   : > { %v860_v45 = vpop.eup %859  ;;  %v611_v46 = vadd.f32 %v858_v37, %v610_v43 }
 0x239   : > { %v862_v47 = vpop.eup %861  ;;  %v560_v49 = vadd.f32 1.0, %v860_v45 }
 0x23a   : > { %v864_v50 = vpop.eup %863  ;;  %v615_v51 = vsel %vm614_vm6, %v858_v37, %v611_v46  ;;  %v578_v52 = vmul.f32 %v862_v47, %v555_v38  ;;  %vm583_vm8 = vweird.f32 %v862_v47 }
 0x23b   : > { %v620_v53 = vsel %vm617_vm7, %v619_v48, %v615_v51  ;;  %865 = vrcp.f32 %v560_v49  ;;  %v507_v54 = vpop.permute.xlu1 %506  ;;  %v1137_v56 = vadd.f32 1.0, %v864_v50  ;;  %vm584_vm10 = vmor %vm582_vm9, %vm583_vm8  ;;  %v661_v9 = vand.u32 2147483647, %v560_v49 }
 0x23c   : > { %685 = vst.msk [vmem:[%s1133_s22 + $0x18] sm:$0xff] %vm377_vm0, %v620_v53  ;;  %v579_v55 = vsub.f32 1.0, %v578_v52  ;;  %v526_v57 = vadd.f32 %v507_v54, %v1116_v15  ;;  %v503_v58 = vpop.permute.xlu0 %502  ;;  %v663_v13 = vand.u32 2147483648, %v560_v49  ;;  %vm657_vm13 = vweird.f32 %v560_v49 }
 0x23d   : > { %v524_v60 = vadd.f32 %v503_v58, %v1119_v16  ;;  %867 = vrcp.f32 %v1137_v56  ;;  %vm1147_vm14 = vcmp.eq.f32.partialorder %v661_v9, 8.507059e+37  ;;  %v573_v27 = vand.u32 2147483648, %v1137_v56 }
 0x23e   : > { %v580_v61 = vmul.f32 %v862_v47, %v579_v55  ;;  %v534_v63 = vsub.f32 0.0, %v526_v57  ;;  %v664_v26 = vor.u32 1.1754944e-38, %v663_v13  ;;  %vm567_vm2 = vweird.f32 %v1137_v56 }
 0x23f   : > { %v532_v0 = vsub.f32 0.0, %v524_v60  ;;  %v574_v37 = vor.u32 1.1754944e-38, %v573_v27 }
 0x240   : > { %v581_v1 = vadd.f32 %v862_v47, %v580_v61  ;;  %v546_v4 = vmul.f32 1.442695, %v534_v63 }
 0x241   : > { %v866_v2 = vpop.eup %865  ;;  %v542_v5 = vmul.f32 1.442695, %v532_v0 }
 0x242   : > { %v585_v6 = vsel %vm584_vm10, %v862_v47, %v581_v1  ;;  %v653_v7 = vmul.f32 %v866_v2, %v560_v49  ;;  %869 = vpow2.f32 %v546_v4  ;;  %vm658_vm12 = vweird.f32 %v866_v2 }
 0x243   : > { %v590_v8 = vsel %vm587_vm11, %v589_v3, %v585_v6  ;;  %v513_v10 = vpop.permute.xlu1 %512  ;;  %v868_v11 = vpop.eup %867  ;;  %871 = vpow2.f32 %v542_v5  ;;  %vm659_vm15 = vmor %vm657_vm13, %vm658_vm12 }
 0x244   : > { %683 = vst.msk [vmem:[%s1133_s22 + $0x8] sm:$0xff] %vm377_vm0, %v590_v8  ;;  %v654_v12 = vsub.f32 1.0, %v653_v7  ;;  %v529_v14 = vadd.f32 %v513_v10, %v1122_v17  ;;  %v509_v15 = vpop.permute.xlu0 %508  ;;  %v563_v16 = vmul.f32 %v868_v11, %v1137_v56  ;;  %vm568_vm1 = vweird.f32 %v868_v11 }
 0x245   : > { %v527_v19 = vadd.f32 %v509_v15, %v1124_v18  ;;  %v571_v18 = vand.u32 2147483647, %v1137_v56  ;;  %vm569_vm3 = vmor %vm567_vm2, %vm568_vm1 }
 0x246   : > { %v655_v20 = vmul.f32 %v866_v2, %v654_v12  ;;  %v537_v21 = vsub.f32 0.0, %v529_v14  ;;  %v564_v23 = vsub.f32 1.0, %v563_v16 }
 0x247   : > { %v535_v24 = vsub.f32 0.0, %v527_v19  ;;  %vm572_vm4 = vcmp.eq.f32.partialorder %v571_v18, 8.507059e+37 }
 0x248   : > { %v656_v25 = vadd.f32 %v866_v2, %v655_v20  ;;  %v552_v17 = vmul.f32 1.442695, %v537_v21  ;;  %v870_v28 = vpop.eup %869  ;;  %v565_v29 = vmul.f32 %v868_v11, %v564_v23 }
 0x249   : > { %v548_v30 = vmul.f32 1.442695, %v535_v24  ;;  %v872_v31 = vpop.eup %871  ;;  %v558_v33 = vadd.f32 1.0, %v870_v28 }
 0x24a   : > { %v660_v32 = vsel %vm659_vm15, %v866_v2, %v656_v25  ;;  %873 = vpow2.f32 %v552_v17  ;;  %v566_v35 = vadd.f32 %v868_v11, %v565_v29  ;;  %v556_v36 = vadd.f32 1.0, %v872_v31 }
 0x24b   : > { %v665_v34 = vsel %vm1147_vm14, %v664_v26, %v660_v32  ;;  %875 = vpow2.f32 %v548_v30  ;;  %v631_v49 = vand.u32 2147483647, %v558_v33  ;;  %v633_v50 = vand.u32 2147483648, %v558_v33 }
 0x24c   : > { %688 = vst.msk [vmem:[%s1133_s22 + $0x30] sm:$0xff] %vm377_vm0, %v665_v34  ;;  %877 = vrcp.f32 %v558_v33  ;;  %v570_v38 = vsel %vm569_vm3, %v868_v11, %v566_v35  ;;  %v601_v53 = vand.u32 2147483647, %v556_v36  ;;  %v603_v54 = vand.u32 2147483648, %v556_v36 }
 0x24d   : > { %879 = vrcp.f32 %v556_v36  ;;  %v575_v39 = vsel %vm572_vm4, %v574_v37, %v570_v38  ;;  %vm627_vm7 = vweird.f32 %v558_v33  ;;  %v634_v58 = vor.u32 1.1754944e-38, %v633_v50 }
 0x24e   : > { %682 = vst.msk [vmem:[%s1133_s22] sm:$0xff] %vm377_vm0, %v575_v39  ;;  %vm597_vm9 = vweird.f32 %v556_v36  ;;  %vm632_vm10 = vcmp.eq.f32.partialorder %v631_v49, 8.507059e+37  ;;  %vm602_vm12 = vcmp.eq.f32.partialorder %v601_v53, 8.507059e+37  ;;  %v604_v63 = vor.u32 1.1754944e-38, %v603_v54 }
 0x250   : > { %v874_v40 = vpop.eup %873 }
 0x251   : > { %v876_v41 = vpop.eup %875  ;;  %v561_v42 = vadd.f32 1.0, %v874_v40 }
 0x252   : > { %v878_v43 = vpop.eup %877  ;;  %v559_v44 = vadd.f32 1.0, %v876_v41 }
 0x253   : > { %v880_v45 = vpop.eup %879  ;;  %v623_v46 = vmul.f32 %v878_v43, %v558_v33  ;;  %881 = vrcp.f32 %v561_v42  ;;  %vm628_vm5 = vweird.f32 %v878_v43  ;;  %v678_v5 = vand.u32 2147483648, %v561_v42 }
 0x254   : > { %v593_v47 = vmul.f32 %v880_v45, %v556_v36  ;;  %883 = vrcp.f32 %v559_v44  ;;  %vm598_vm6 = vweird.f32 %v880_v45  ;;  %vm629_vm8 = vmor %vm627_vm7, %vm628_vm5  ;;  %v676_v7 = vand.u32 2147483647, %v561_v42 }
 0x255   : > { %v624_v48 = vsub.f32 1.0, %v623_v46  ;;  %vm599_vm11 = vmor %vm597_vm9, %vm598_vm6  ;;  %vm672_vm14 = vweird.f32 %v561_v42  ;;  %v648_v9 = vand.u32 2147483648, %v559_v44  ;;  %v646_v12 = vand.u32 2147483647, %v559_v44 }
 0x256   : > { %v594_v51 = vsub.f32 1.0, %v593_v47  ;;  %v679_v13 = vor.u32 1.1754944e-38, %v678_v5  ;;  %vm677_vm2 = vcmp.eq.f32.partialorder %v676_v7, 8.507059e+37  ;;  %vm642_vm3 = vweird.f32 %v559_v44 }
 0x257   : > { %v625_v52 = vmul.f32 %v878_v43, %v624_v48  ;;  %v649_v19 = vor.u32 1.1754944e-38, %v648_v9  ;;  %vm647_vm5 = vcmp.eq.f32.partialorder %v646_v12, 8.507059e+37 }
 0x258   : > { %v595_v55 = vmul.f32 %v880_v45, %v594_v51 }
 0x259   : > { %v882_v56 = vpop.eup %881  ;;  %v626_v57 = vadd.f32 %v878_v43, %v625_v52 }
 0x25a   : > { %v596_v59 = vadd.f32 %v880_v45, %v595_v55  ;;  %v668_v60 = vmul.f32 %v882_v56, %v561_v42  ;;  %v884_v61 = vpop.eup %883  ;;  %vm673_vm13 = vweird.f32 %v882_v56 }
 0x25b   : > { %v630_v62 = vsel %vm629_vm8, %v878_v43, %v626_v57  ;;  %v638_v3 = vmul.f32 %v884_v61, %v559_v44  ;;  %vm643_vm15 = vweird.f32 %v884_v61  ;;  %vm674_vm1 = vmor %vm672_vm14, %vm673_vm13 }
 0x25c   : > { %v635_v0 = vsel %vm632_vm10, %v634_v58, %v630_v62  ;;  %v600_v1 = vsel %vm599_vm11, %v880_v45, %v596_v59  ;;  %v669_v2 = vsub.f32 1.0, %v668_v60  ;;  %vm644_vm4 = vmor %vm642_vm3, %vm643_vm15 }
 0x25d   : > { %686 = vst.msk [vmem:[%s1133_s22 + $0x20] sm:$0xff] %vm377_vm0, %v635_v0  ;;  %v605_v4 = vsel %vm602_vm12, %v604_v63, %v600_v1  ;;  %v639_v8 = vsub.f32 1.0, %v638_v3 }
 0x25e   : > { %684 = vst.msk [vmem:[%s1133_s22 + $0x10] sm:$0xff] %vm377_vm0, %v605_v4  ;;  %v670_v6 = vmul.f32 %v882_v56, %v669_v2 }
 0x25f   : > { %v640_v11 = vmul.f32 %v884_v61, %v639_v8 }
 0x260   : > { %v671_v10 = vadd.f32 %v882_v56, %v670_v6 }
 0x261   : > { %v641_v15 = vadd.f32 %v884_v61, %v640_v11 }
 0x262   : > { %v675_v14 = vsel %vm674_vm1, %v882_v56, %v671_v10 }
 0x263   : > { %v680_v16 = vsel %vm677_vm2, %v679_v13, %v675_v14  ;;  %v645_v20 = vsel %vm644_vm4, %v884_v61, %v641_v15 }
 0x264   : > { %689 = vst.msk [vmem:[%s1133_s22 + $0x38] sm:$0xff] %vm377_vm0, %v680_v16  ;;  %v650_v21 = vsel %vm647_vm5, %v649_v19, %v645_v20 }
 0x265   : > { %687 = vst.msk [vmem:[%s1133_s22 + $0x28] sm:$0xff] %vm377_vm0, %v650_v21 }
 0x266 PF: > { %s16_s17 = sadd.s32 1, %s965_s17   ;;  %s1194_s12 = smov %s949_s13 }
 0x267   : > { %p13_p0 = scmp.ge.s32.totalorder %s16_s17, 4   ;;  %s1195_s13 = smov %s953_s14 }
 0x268   : > { %s1196_s14 = smov %s1039_s24  ;;  %s1197_s15 = smov %s961_s16 }
 0x269   : > { %s1198_s16 = smov %s1200_s19  ;;  %15 = sbr.rel (!%p13_p0) target bundleno = 4 (0x4), region = 80 }
 0x26e   :  { %711 = vsyncpa [#allocation5], 1 }
 0x26f   :  { %713 = vsyncpa [#allocation5 + $0x1], 1 }

</bundles_post_ra>
